<compile_context>
chip_gen: v7x
topology: tpu7x:2x2x1
jax: 0.10.0
libtpu: 0.0.40
codegen_flags: <defaults>
</compile_context>

<pallas_src>
import functools
import math

import jax
import jax.numpy as jnp
from jax import lax
from jax.experimental import pallas as pl
from jax.experimental.pallas import tpu as pltpu


# --------------------- fused encoder kernel (1 pallas_call) ---------------------


def _encoder_kernel(p_ref, cw_ref, cb_ref, fw_ref, fb_ref, out_ref, *, n, hw, cout):
    """conv3x3(+bias,ReLU) -> global-avg-pool -> linear(+bias) -> L2 normalize.

    p_ref  : (N*H*W, 9*C)  lane-dense bf16 im2col patches
    cw_ref : (9*C, COUT)   bf16 conv weights (tap-major rows)
    cb_ref : (1, COUT)     f32 conv bias
    fw_ref : (COUT, E)     bf16 fc weights
    fb_ref : (1, E)        f32 fc bias
    out_ref: (N, E)        f32 L2-normalized embeddings (the module's `logits`)
    """
    # Single MXU contraction over the im2col axis (bf16 operands, f32 accumulate).
    conv = jnp.dot(p_ref[...], cw_ref[...], preferred_element_type=jnp.float32)
    conv = jnp.maximum(conv + cb_ref[...], 0.0)                      # (M, COUT)

    # Global average pool: reduce the spatial axis; channels stay on lanes.
    pooled = jnp.sum(conv.reshape(n, hw, cout), axis=1) * (1.0 / hw)  # (N, COUT)

    # Linear projection to the embedding size.
    emb = jnp.dot(pooled.astype(jnp.bfloat16), fw_ref[...],
                  preferred_element_type=jnp.float32) + fb_ref[...]   # (N, E)

    # F.normalize: x / max(||x||, 1e-12) == x * rsqrt(max(||x||^2, 1e-24)) (EUP rsqrt).
    ssq = jnp.sum(emb * emb, axis=-1, keepdims=True)
    out_ref[...] = emb * lax.rsqrt(jnp.maximum(ssq, 1e-24))


def encoder_forward(params, x):
    """x: (N, C, H, W) NCHW f32 -> (N, E) L2-normalized embeddings (one fused kernel)."""
    N, C, H, W = x.shape
    COUT = params["conv_w"].shape[0]
    E = params["fc_w"].shape[1]
    HW = H * W

    # One cheap XLA pass over the (small) input: NCHW -> NHWC, pad, im2col into a
    # lane-dense (M, 9*C) bf16 operand.
    xp = jnp.pad(jnp.transpose(x, (0, 2, 3, 1)), ((0, 0), (1, 1), (1, 1), (0, 0)))
    patches = jnp.concatenate(
        [xp[:, di:di + H, dj:dj + W, :] for di in range(3) for dj in range(3)],
        axis=-1).reshape(N * HW, 9 * C).astype(jnp.bfloat16)

    # Tiny one-time parameter reshuffles / casts (weights only, not activations).
    cw = jnp.transpose(params["conv_w"], (2, 3, 1, 0)).reshape(9 * C, COUT).astype(jnp.bfloat16)
    cb = params["conv_b"].reshape(1, COUT)
    fw = params["fc_w"].astype(jnp.bfloat16)
    fb = params["fc_b"].reshape(1, E)

    def full(shape):
        return pl.BlockSpec(shape, lambda i: (0,) * len(shape))

    # TODO(synk): at real image sizes, tile the batch/M axis with a leading
    # "parallel" grid axis (v7x has 2 TensorCores) and size the block from a VMEM
    # budget; at this toy size (M = N*H*W = 512 rows) one block is the whole problem.
    return pl.pallas_call(
        functools.partial(_encoder_kernel, n=N, hw=HW, cout=COUT),
        out_shape=jax.ShapeDtypeStruct((N, E), jnp.float32),
        grid=(1,),
        in_specs=[full(patches.shape), full(cw.shape), full(cb.shape),
                  full(fw.shape), full(fb.shape)],
        out_specs=full((N, E)),
        compiler_params=pltpu.CompilerParams(dimension_semantics=("arbitrary",)),
    )(patches, cw, cb, fw, fb)


# ------------------- ArcFace loss kernel (class-tiled, online LSE) -------------------


def _arcface_kernel(lbl_ref, emb_ref, w_ref, loss_ref,
                    m_sc, s_sc, tcos_sc, hit_sc,
                    *, scale, cos_m, sin_m, n_rows, tk, num_valid, has_pad):
    """Streaming ArcFace cross-entropy over class tiles (flash-softmax style LSE).

    The stream sums plain scale*cos; the margin (clip/sqrt/phi) is applied only to
    the single target column per row, by patching the sum at finalize.
    """
    k = pl.program_id(0)

    @pl.when(k == 0)
    def _init():
        m_sc[...] = jnp.full_like(m_sc, -jnp.inf)
        s_sc[...] = jnp.zeros_like(s_sc)
        tcos_sc[...] = jnp.zeros_like(tcos_sc)
        hit_sc[...] = jnp.zeros_like(hit_sc)

    # cos(theta): rows of emb and class centers are pre-normalized bf16; contract
    # over E directly (weights stay (TK, E), no transpose pass).
    cos = lax.dot_general(emb_ref[...], w_ref[...],
                          (((1,), (1,)), ((), ())),
                          preferred_element_type=jnp.float32)          # (N, TK)

    col = lax.broadcasted_iota(jnp.int32, (n_rows, tk), 1) + k * tk
    mask = col == lbl_ref[...]                                          # target columns

    logits = scale * cos
    if has_pad:
        # mask out zero-padded class rows (only compiled in when K was padded)
        logits = jnp.where(col < num_valid, logits, -1e30)

    # Online softmax statistics, resident in VMEM scratch across class tiles.
    m_prev = m_sc[...]
    m_new = jnp.maximum(m_prev, jnp.max(logits, axis=-1, keepdims=True))
    corr = jnp.exp(m_prev - m_new)
    s_sc[...] = corr * s_sc[...] + jnp.sum(jnp.exp(logits - m_new),
                                           axis=-1, keepdims=True)
    m_sc[...] = m_new

    # Gather the per-row target cosine (each label falls in exactly one class tile).
    tcos_sc[...] += jnp.sum(jnp.where(mask, cos, 0.0), axis=-1, keepdims=True)
    hit_sc[...] += jnp.sum(mask.astype(jnp.float32), axis=-1, keepdims=True)

    @pl.when(k == pl.num_programs(0) - 1)
    def _finalize():
        m_f = m_sc[...]
        hit = hit_sc[...] > 0.0
        cos_t = jnp.clip(tcos_sc[...], -1.0, 1.0)                       # (N, 1)
        sin_t = jnp.sqrt(jnp.maximum(1.0 - cos_t * cos_t, 1e-12))
        phi_t = cos_t * cos_m - sin_t * sin_m                           # cos(theta + m)
        # Patch the streamed sum: the target column was summed as exp(s*cos_t - m);
        # replace it with exp(s*phi_t - m).  Bounded: s*(phi_t - cos_t) <= 2*s*sin(m/2).
        delta = jnp.exp(scale * phi_t - m_f) - jnp.exp(scale * cos_t - m_f)
        s_p = s_sc[...] + jnp.where(hit, delta, 0.0)
        lse = m_f + jnp.log(s_p)                                        # (N, 1)
        target_logit = jnp.where(hit, scale * phi_t, 0.0)
        per_row = lse - target_logit
        # TODO(synk): pytorch-metric-learning averages over non-zero-loss rows; CE is
        # essentially never exactly zero, so a plain batch mean is used here.
        loss_ref[...] = jnp.sum(per_row, axis=0, keepdims=True) * (1.0 / n_rows)


def _round_up(x, m):
    return ((x + m - 1) // m) * m


def _class_tile(num_classes, emb_dim, *, dtype_bytes=2, n_buffers=3,
                budget_bytes=6 << 20):
    """Class-tile size from a VMEM byte budget (bf16 stream, up to 3 buffers),
    so the same code fits v5e/v6e (128 MiB) and v7x (64 MiB) without a fork."""
    tk = budget_bytes // max(1, emb_dim * dtype_bytes * n_buffers)
    tk = max(8, min(2048, (tk // 8) * 8))
    return min(tk, _round_up(num_classes, 8))


def arcface_loss(norm_emb, class_w, labels, *, margin_rad, scale, class_tile=None):
    """norm_emb (N, E) unit rows, class_w (K, E), labels (N,) int -> scalar loss."""
    N, E = norm_emb.shape
    K = class_w.shape[0]

    tk = class_tile if class_tile is not None else _class_tile(K, E)
    tk = max(8, (tk // 8) * 8)
    Kp = _round_up(K, tk)
    has_pad = Kp != K

    # One fused XLA elementwise pass over the class centers: L2-normalize rows and
    # cast to bf16 so the kernel's only large streamed operand is half the HBM bytes.
    # (In real training keep bf16 masters / fuse into the step.)
    wn = class_w * lax.rsqrt(
        jnp.maximum(jnp.sum(class_w * class_w, axis=-1, keepdims=True), 1e-24))
    wn = wn.astype(jnp.bfloat16)
    if has_pad:
        wn = jnp.pad(wn, ((0, Kp - K), (0, 0)))

    emb_bf16 = norm_emb.astype(jnp.bfloat16)       # hoisted: cast once, not per tile
    lbl = labels.reshape(N, 1).astype(jnp.int32)

    n_tiles = Kp // tk
    w_kwargs = {}
    if n_tiles >= 4:
        # Deepen buffering on the only large streaming input (cheap at bf16) to hide
        # DMA issue/jitter once there are enough tiles to pipeline.
        w_kwargs = dict(pipeline_mode=pl.Buffered(3))

    out = pl.pallas_call(
        functools.partial(_arcface_kernel, scale=float(scale),
                          cos_m=float(math.cos(margin_rad)),
                          sin_m=float(math.sin(margin_rad)),
                          n_rows=N, tk=tk, num_valid=K, has_pad=has_pad),
        out_shape=jax.ShapeDtypeStruct((1, 1), jnp.float32),
        grid=(n_tiles,),
        in_specs=[pl.BlockSpec((N, 1), lambda k: (0, 0)),
                  pl.BlockSpec((N, E), lambda k: (0, 0)),
                  pl.BlockSpec((tk, E), lambda k: (k, 0), **w_kwargs)],
        out_specs=pl.BlockSpec((1, 1), lambda k: (0, 0)),
        scratch_shapes=[pltpu.VMEM((N, 1), jnp.float32)] * 4,
        compiler_params=pltpu.CompilerParams(
            dimension_semantics=("arbitrary",),
            vmem_limit_bytes=32 << 20),
    )(lbl, emb_bf16, wn)
    return out[0, 0]


def _arcface_ref(norm_emb, class_w, labels, *, margin_rad, scale):
    """Pure-JAX reference (same bf16 operand rounding as the kernel)."""
    wn = class_w * lax.rsqrt(
        jnp.maximum(jnp.sum(class_w * class_w, axis=-1, keepdims=True), 1e-24))
    e = norm_emb.astype(jnp.bfloat16).astype(jnp.float32)
    w = wn.astype(jnp.bfloat16).astype(jnp.float32)
    cos = e @ w.T                                                   # (N, K)
    K = cos.shape[1]
    onehot = labels[:, None] == jnp.arange(K)[None, :]
    cos_t = jnp.sum(jnp.where(onehot, cos, 0.0), axis=-1, keepdims=True)
    cos_t = jnp.clip(cos_t, -1.0, 1.0)
    sin_t = jnp.sqrt(jnp.maximum(1.0 - cos_t * cos_t, 1e-12))
    phi_t = cos_t * math.cos(margin_rad) - sin_t * math.sin(margin_rad)
    logits = jnp.where(onehot, scale * phi_t, scale * cos)
    m = jnp.max(logits, axis=-1, keepdims=True)
    lse = m + jnp.log(jnp.sum(jnp.exp(logits - m), axis=-1, keepdims=True))
    return jnp.mean(lse - scale * phi_t)


# --------------------------------- model glue ---------------------------------


def init_params(key, cin, cout, emb_size, num_classes):
    k1, k2, k3, k4, k5 = jax.random.split(key, 5)
    return {
        "conv_w": 0.1 * jax.random.normal(k1, (cout, cin, 3, 3), jnp.float32),
        "conv_b": 0.01 * jax.random.normal(k2, (cout,), jnp.float32),
        "fc_w": 0.1 * jax.random.normal(k3, (cout, emb_size), jnp.float32),
        "fc_b": 0.01 * jax.random.normal(k4, (emb_size,), jnp.float32),
        # ArcFace class-center weights (num_classes, emb_size)
        "arc_w": jax.random.normal(k5, (num_classes, emb_size), jnp.float32),
    }


def net_forward(params, x, labels=None, *, margin_deg=28.6, scale=64.0):
    """Mirrors Net.forward: returns logits, or (loss, logits) if labels are given."""
    logits = encoder_forward(params, x)          # = F.normalize(encoder(x))
    if labels is None:
        return logits
    loss = arcface_loss(logits, params["arc_w"], labels,
                        margin_rad=math.radians(margin_deg), scale=scale)
    return loss, logits


if __name__ == "__main__":
    key = jax.random.PRNGKey(0)
    kx, kp, kw2 = jax.random.split(key, 3)

    N, C, H, W = 2, 3, 16, 16
    COUT, EMB, NUM_CLASSES = 64, 32, 8
    MARGIN = math.radians(28.6)
    SCALE = 64.0

    x = jax.random.normal(kx, (N, C, H, W), jnp.float32)
    labels = jnp.array([1, 5], dtype=jnp.int32)
    params = init_params(kp, C, COUT, EMB, NUM_CLASSES)

    # training path (loss, logits)
    loss, logits = net_forward(params, x, labels)
    jax.block_until_ready((loss, logits))

    # inference path (labels=None) like the PyTorch module
    logits_only = net_forward(params, x, None)
    jax.block_until_ready(logits_only)

    # sanity: unit-norm embeddings, shapes, finite loss, and loss vs pure-JAX ref
    norms = jnp.sqrt(jnp.sum(logits * logits, axis=-1))
    assert bool(jnp.all(jnp.abs(norms - 1.0) < 1e-3))
    assert logits.shape == (N, EMB) and loss.shape == ()
    assert bool(jnp.isfinite(loss))
    loss_ref = _arcface_ref(logits, params["arc_w"], labels,
                            margin_rad=MARGIN, scale=SCALE)
    assert bool(jnp.abs(loss - loss_ref) < 2e-2)

    # exercise the multi-tile streaming-LSE + padded-K path (K=20 -> 3 tiles of 8)
    w20 = jax.random.normal(kw2, (20, EMB), jnp.float32)
    labels20 = jnp.array([3, 17], dtype=jnp.int32)
    loss20 = arcface_loss(logits, w20, labels20,
                          margin_rad=MARGIN, scale=SCALE, class_tile=8)
    jax.block_until_ready(loss20)
    loss20_ref = _arcface_ref(logits, w20, labels20, margin_rad=MARGIN, scale=SCALE)
    assert bool(jnp.isfinite(loss20))
    assert bool(jnp.abs(loss20 - loss20_ref) < 2e-2)

    print("KERNEL_OK")
</pallas_src>

<mosaic_0001>
module attributes {stable_mosaic.version = 11 : i64} {
  func.func @_encoder_kernel(%arg0: i32, %arg1: memref<512x27xbf16, #tpu.memory_space<vmem>>, %arg2: memref<27x64xbf16, #tpu.memory_space<vmem>>, %arg3: memref<1x64xf32, #tpu.memory_space<vmem>>, %arg4: memref<64x32xbf16, #tpu.memory_space<vmem>>, %arg5: memref<1x32xf32, #tpu.memory_space<vmem>>, %arg6: memref<2x32xf32, #tpu.memory_space<vmem>>) attributes {dimension_semantics = [#tpu.dimension_semantics<arbitrary>], iteration_bounds = array<i64: 1>, scalar_prefetch = 0 : i64, scratch_operands = 0 : i64, tpu.core_type = #tpu.core_type<tc>, window_params = [{pipeline_mode = #tpu.pipeline_mode<synchronous>, transform_indices = @transform_0, window_bounds = array<i64: 512, 27>}, {pipeline_mode = #tpu.pipeline_mode<synchronous>, transform_indices = @transform_1, window_bounds = array<i64: 27, 64>}, {pipeline_mode = #tpu.pipeline_mode<synchronous>, transform_indices = @transform_2, window_bounds = array<i64: 1, 64>}, {pipeline_mode = #tpu.pipeline_mode<synchronous>, transform_indices = @transform_3, window_bounds = array<i64: 64, 32>}, {pipeline_mode = #tpu.pipeline_mode<synchronous>, transform_indices = @transform_4, window_bounds = array<i64: 1, 32>}, {pipeline_mode = #tpu.pipeline_mode<synchronous>, transform_indices = @transform_5, window_bounds = array<i64: 2, 32>}]} {
    %c0 = arith.constant 0 : index
    %c0_0 = arith.constant 0 : index
    %0 = vector.load %arg1[%c0, %c0_0] : memref<512x27xbf16, #tpu.memory_space<vmem>>, vector<512x27xbf16>
    %c0_1 = arith.constant 0 : index
    %c0_2 = arith.constant 0 : index
    %1 = vector.load %arg2[%c0_1, %c0_2] : memref<27x64xbf16, #tpu.memory_space<vmem>>, vector<27x64xbf16>
    %cst = arith.constant dense<0.000000e+00> : vector<512x64xf32>
    %2 = tpu.matmul %0, %1, %cst {dimension_numbers = #tpu.dot_dimension_numbers<[1], [0], [0], [1], [0, 0, 1, 1], [], []>} : vector<512x27xbf16>, vector<27x64xbf16>, vector<512x64xf32> -> vector<512x64xf32>
    %c0_3 = arith.constant 0 : index
    %c0_4 = arith.constant 0 : index
    %3 = vector.load %arg3[%c0_3, %c0_4] : memref<1x64xf32, #tpu.memory_space<vmem>>, vector<1x64xf32>
    %4 = vector.broadcast %3 : vector<1x64xf32> to vector<512x64xf32>
    %5 = arith.addf %2, %4 : vector<512x64xf32>
    %cst_5 = arith.constant 0.000000e+00 : f32
    %6 = vector.broadcast %cst_5 : f32 to vector<512x64xf32>
    %7 = arith.maximumf %5, %6 : vector<512x64xf32>
    %8 = vector.shape_cast %7 : vector<512x64xf32> to vector<2x256x64xf32>
    %cst_6 = arith.constant dense<0.000000e+00> : vector<2x64xf32>
    %9 = vector.multi_reduction <add>, %8, %cst_6 [1] : vector<2x256x64xf32> to vector<2x64xf32>
    %cst_7 = arith.constant 3.906250e-03 : f32
    %10 = vector.broadcast %cst_7 : f32 to vector<2x64xf32>
    %11 = arith.mulf %9, %10 : vector<2x64xf32>
    %12 = arith.truncf %11 : vector<2x64xf32> to vector<2x64xbf16>
    %c0_8 = arith.constant 0 : index
    %c0_9 = arith.constant 0 : index
    %13 = vector.load %arg4[%c0_8, %c0_9] : memref<64x32xbf16, #tpu.memory_space<vmem>>, vector<64x32xbf16>
    %cst_10 = arith.constant dense<0.000000e+00> : vector<2x32xf32>
    %14 = tpu.matmul %12, %13, %cst_10 {dimension_numbers = #tpu.dot_dimension_numbers<[1], [0], [0], [1], [0, 0, 1, 1], [], []>} : vector<2x64xbf16>, vector<64x32xbf16>, vector<2x32xf32> -> vector<2x32xf32>
    %c0_11 = arith.constant 0 : index
    %c0_12 = arith.constant 0 : index
    %15 = vector.load %arg5[%c0_11, %c0_12] : memref<1x32xf32, #tpu.memory_space<vmem>>, vector<1x32xf32>
    %16 = vector.broadcast %15 : vector<1x32xf32> to vector<2x32xf32>
    %17 = arith.addf %14, %16 : vector<2x32xf32>
    %18 = arith.mulf %17, %17 : vector<2x32xf32>
    %cst_13 = arith.constant dense<0.000000e+00> : vector<2xf32>
    %19 = vector.multi_reduction <add>, %18, %cst_13 [1] : vector<2x32xf32> to vector<2xf32>
    %20 = vector.shape_cast %19 : vector<2xf32> to vector<2x1xf32>
    %cst_14 = arith.constant 1.000000e-24 : f32
    %21 = vector.broadcast %cst_14 : f32 to vector<2x1xf32>
    %22 = arith.maximumf %20, %21 : vector<2x1xf32>
    %23 = math.rsqrt %22 : vector<2x1xf32>
    %24 = vector.broadcast %23 : vector<2x1xf32> to vector<2x32xf32>
    %25 = arith.mulf %17, %24 : vector<2x32xf32>
    %c0_15 = arith.constant 0 : index
    %c0_16 = arith.constant 0 : index
    %26 = vector.load %arg6[%c0_15, %c0_16] : memref<2x32xf32, #tpu.memory_space<vmem>>, vector<2x32xf32>
    tpu.vector_store %arg6[%c0_15, %c0_16], %25 {strides = array<i32>} : memref<2x32xf32, #tpu.memory_space<vmem>>, vector<2x32xf32>,
    return
  }
  func.func @transform_0(%arg0: i32) -> (i32, i32) {
    %c0_i32 = arith.constant 0 : i32
    %c0_i32_0 = arith.constant 0 : i32
    %c0_i32_1 = arith.constant 0 : i32
    return %c0_i32, %c0_i32_0 : i32, i32
  }
  func.func @transform_1(%arg0: i32) -> (i32, i32) {
    %c0_i32 = arith.constant 0 : i32
    %c0_i32_0 = arith.constant 0 : i32
    %c0_i32_1 = arith.constant 0 : i32
    return %c0_i32, %c0_i32_0 : i32, i32
  }
  func.func @transform_2(%arg0: i32) -> (i32, i32) {
    %c0_i32 = arith.constant 0 : i32
    %c0_i32_0 = arith.constant 0 : i32
    %c0_i32_1 = arith.constant 0 : i32
    return %c0_i32, %c0_i32_0 : i32, i32
  }
  func.func @transform_3(%arg0: i32) -> (i32, i32) {
    %c0_i32 = arith.constant 0 : i32
    %c0_i32_0 = arith.constant 0 : i32
    %c0_i32_1 = arith.constant 0 : i32
    return %c0_i32, %c0_i32_0 : i32, i32
  }
  func.func @transform_4(%arg0: i32) -> (i32, i32) {
    %c0_i32 = arith.constant 0 : i32
    %c0_i32_0 = arith.constant 0 : i32
    %c0_i32_1 = arith.constant 0 : i32
    return %c0_i32, %c0_i32_0 : i32, i32
  }
  func.func @transform_5(%arg0: i32) -> (i32, i32) {
    %c0_i32 = arith.constant 0 : i32
    %c0_i32_0 = arith.constant 0 : i32
    %c0_i32_1 = arith.constant 0 : i32
    return %c0_i32, %c0_i32_0 : i32, i32
  }
}

</mosaic_0001>

<bundles_post_ra>
// kernel: tpu_custom_call.1
= control target key start
LH: loop header
LB: loop body
LE: loop exit
PB: predicated region body
PF: predicated region fallthrough
CT: control target
= control target key end

     0   :  { %vm365_vm0 = vcmask 1044480   ;;  %vm366_vm1 = vcmask 1045504   ;;  %v1244_v2 = vmov 65535   ;;  %vm268_vm2 = vcmask 220160   ;;  %s1666_s0 = inlined_call_operand.vmem [shape: bf16[512,27], index: 0, kind: input, shape index: {}]   ;;  %s1667_s1 = inlined_call_operand.vmem [shape: bf16[27,64], index: 1, kind: input, shape index: {}]   ;;  %s1668_s2 = inlined_call_operand.vmem [shape: f32[1,64], index: 2, kind: input, shape index: {}]   ;;  %s1669_s3 = inlined_call_operand.vmem [shape: bf16[64,32], index: 3, kind: input, shape index: {}]   ;;  %s1670_s4 = inlined_call_operand.vmem [shape: f32[1,32], index: 4, kind: input, shape index: {}]   ;;  %s1671_s5 = inlined_call_operand.hbm [shape: f32[2,32], index: 5, kind: output, shape index: {}]  }
   0x1   :  { %v1180_v0 = vld [vmem:[%s1667_s1] sm:$0xff]   ;;  %v1181_v1 = vld [vmem:[%s1667_s1 + $0x8] sm:$0x3f]   ;;  %v367_v3 = vsel %vm365_vm0, 4294967295, %v1244_v2  ;;  %v1184_v8 = vld [vmem:[%s1666_s0 + $0x10] sm:$0xff]  }
   0x2   :  { %1092 = vmatprep.subr.bf16.mxu0 %v1180_v0  ;;  %1172 = vmatprep.subr.bf16.mxu1 %v1180_v0  ;;  %v1182_v4 = vld [vmem:[%s1666_s0] sm:$0xff]   ;;  %v368_v5 = vsel %vm366_vm1, %v367_v3, 0  ;;  %v1183_v7 = vld [vmem:[%s1666_s0 + $0x8] sm:$0xff]   ;;  %v1185_v9 = vld [vmem:[%s1666_s0 + $0x18] sm:$0xff]  }
   0x3   :  { %1093 = vmatpush3.bf16.msra.mxu0 %v1180_v0  ;;  %1174 = vmatpush3.bf16.msra.mxu1 %v1180_v0  ;;  %v370_v6 = vand.u32 %v1181_v1, %v368_v5  ;;  %v1186_v10 = vld [vmem:[%s1666_s0 + $0x20] sm:$0xff]   ;;  %v1187_v11 = vld [vmem:[%s1666_s0 + $0x28] sm:$0xff]   ;;  %v1200_v12 = vld [vmem:[%s1666_s0 + $0x90] sm:$0xff]  }
   0x4   :  { %1096 = vmatprep.mubr.msk.bf16.mxu0 %vm268_vm2, %v1182_v4  ;;  %v1201_v13 = vld [vmem:[%s1666_s0 + $0x98] sm:$0xff]   ;;  %1132 = vmatprep.mubr.msk.bf16.mxu1 %vm268_vm2, %v1200_v12  ;;  %v1202_v14 = vld [vmem:[%s1666_s0 + $0xa0] sm:$0xff]   ;;  %v1188_v15 = vld [vmem:[%s1666_s0 + $0x30] sm:$0xff]  }
   0x5   :  { %1094 = vmatprep.subr.bf16.mxu0 %v370_v6  ;;  %1173 = vmatprep.subr.bf16.mxu1 %v370_v6  ;;  %v1203_v16 = vld [vmem:[%s1666_s0 + $0xa8] sm:$0xff]   ;;  %v1204_v17 = vld [vmem:[%s1666_s0 + $0xb0] sm:$0xff]   ;;  %v1189_v18 = vld [vmem:[%s1666_s0 + $0x38] sm:$0xff]  }
   0x6   :  { %v1190_v19 = vld [vmem:[%s1666_s0 + $0x40] sm:$0xff]   ;;  %v1205_v20 = vld [vmem:[%s1666_s0 + $0xb8] sm:$0xff]  }
   0x7   :  { %1095 = vmatpush3.bf16.msra.mxu0 %v370_v6  ;;  %1175 = vmatpush3.bf16.msra.mxu1 %v370_v6  ;;  %v1206_v21 = vld [vmem:[%s1666_s0 + $0xc0] sm:$0xff]  }
   0xa   :  { %1097 = vmatmul.mubr.msk.bf16.vlgmr.msra.gmra.mrb[0].mxu0 %vm268_vm2, %v1183_v7  ;;  %1133 = vmatmul.mubr.msk.bf16.vlgmr.msra.gmra.mrb[0].mxu1 %vm268_vm2, %v1201_v13 }
   0xb   :  { %1100 = vmatprep.mubr.msk.bf16.mxu0 %vm268_vm2, %v1184_v8  ;;  %1136 = vmatprep.mubr.msk.bf16.mxu1 %vm268_vm2, %v1202_v14 }
  0x12   :  { %1101 = vmatmul.mubr.msk.bf16.gmra.mrb[4].mxu0 %vm268_vm2, %v1185_v9  ;;  %1137 = vmatmul.mubr.msk.bf16.gmra.mrb[4].mxu1 %vm268_vm2, %v1203_v16 }
  0x13   :  { %1104 = vmatprep.mubr.msk.bf16.mxu0 %vm268_vm2, %v1186_v10  ;;  %1140 = vmatprep.mubr.msk.bf16.mxu1 %vm268_vm2, %v1204_v17 }
  0x1a   :  { %1105 = vmatmul.mubr.msk.bf16.gmra.mrb[8].mxu0 %vm268_vm2, %v1187_v11 }
  0x1b   :  { %1108 = vmatprep.mubr.msk.bf16.mxu0 %vm268_vm2, %v1188_v15 }
  0x22   :  { %1109 = vmatmul.mubr.msk.bf16.gmra.mrb[12].mxu0 %vm268_vm2, %v1189_v18 }
  0x23   :  { %1112 = vmatprep.mubr.msk.bf16.mxu0 %vm268_vm2, %v1190_v19 }
  0x24   :  { %10 = vsyncpa [#allocation3], 0  ;;  %v1191_v22 = vld [vmem:[%s1666_s0 + $0x48] sm:$0xff]   ;;  %v1192_v23 = vld [vmem:[%s1666_s0 + $0x50] sm:$0xff]   ;;  %1141 = vmatmul.mubr.msk.bf16.gmra.mrb[8].mxu1 %vm268_vm2, %v1205_v20  ;;  %v1245_v39 = vmov 0.0   ;;  %vm725_vm3 = vcmask 523264  }
  0x25   :  { %1144 = vmatprep.mubr.msk.bf16.mxu1 %vm268_vm2, %v1206_v21  ;;  %v1207_v24 = vld [vmem:[%s1666_s0 + $0xc8] sm:$0xff]   ;;  %v1208_v25 = vld [vmem:[%s1666_s0 + $0xd0] sm:$0xff]   ;;  %v1193_v26 = vld [vmem:[%s1666_s0 + $0x58] sm:$0xff]   ;;  %1160 = vmatprep.subr.bf16.mxu1 %v1245_v39  ;;  %vm1246_vm4 = vmmov 0   ;;  %vm887_vm5 = vcmask 1041409   ;;  %vm958_vm6 = vcmask 254976  }
  0x26   :  { %v1194_v27 = vld [vmem:[%s1666_s0 + $0x60] sm:$0xff]   ;;  %v1209_v28 = vld [vmem:[%s1666_s0 + $0xd8] sm:$0xff]   ;;  %v1195_v30 = vld [vmem:[%s1666_s0 + $0x68] sm:$0xff]   ;;  %s1247_s17 = smov [#allocation2]  }
  0x27   :  { %v1210_v29 = vld [vmem:[%s1666_s0 + $0xe0] sm:$0xff]   ;;  %v1196_v31 = vld [vmem:[%s1666_s0 + $0x70] sm:$0xff]   ;;  %v1211_v32 = vld [vmem:[%s1666_s0 + $0xe8] sm:$0xff]   ;;  %s972_s18 = sshll.u32 %s1247_s17, 4  ;;  %s973_s18 = int_to_ptr.vmem [resolvable:$true] %s972_s18 }
  0x28   :  { %v1212_v33 = vld [vmem:[%s1666_s0 + $0xf0] sm:$0xff]   ;;  %v1197_v34 = vld [vmem:[%s1666_s0 + $0x78] sm:$0xff]   ;;  %v1198_v35 = vld [vmem:[%s1666_s0 + $0x80] sm:$0xff]   ;;  %s1220_s19 = scalar_lea.vmem %s973_s18, 32  ;;  %p1225_p1 = scmp.lt.s32.totalorder %s973_s18, %s973_s18 }
  0x29   :  { %v1213_v36 = vld [vmem:[%s1666_s0 + $0xf8] sm:$0xff]   ;;  %v1199_v37 = vld [vmem:[%s1666_s0 + $0x88] sm:$0xff]   ;;  %v1214_v38 = vld [vmem:[%s1669_s3] sm:$0xff]   ;;  %p1221_p0 = scmp.ne.s32.totalorder %s973_s18, %s1220_s19  ;;  %p1226_p2 = scmp.lt.s32.totalorder %s1220_s19, %s1220_s19 }
  0x2a   :  { %1113 = vmatmul.mubr.msk.bf16.gmra.mrb[16].mxu0 %vm268_vm2, %v1191_v22  ;;  %1161 = vmatpush3.bf16.msra.mxu1 %v1214_v38  ;;  %v1215_v40 = vld [vmem:[%s1669_s3 + $0x8] sm:$0xff]   ;;  %v1424_v41 = vld [vmem:[%s1668_s2] ss:$0 sm:$0xff]  ;;  %v1217_v38 = vld [vmem:[%s1669_s3 + $0x18] sm:$0xff]  }
  0x2b   :  { %1116 = vmatprep.mubr.msk.bf16.mxu0 %vm268_vm2, %v1192_v23  ;;  %1162 = vmatprep.subr.bf16.mxu1 %v1245_v39  ;;  %p1227_p3 = por %p1226_p2, %p1225_p1 }
  0x2c   :  { %1145 = vmatmul.mubr.msk.bf16.gmra.mrb[12].mxu1 %vm268_vm2, %v1207_v24 }
  0x2d   :  { %1148 = vmatprep.mubr.msk.bf16.mxu1 %vm268_vm2, %v1208_v25  ;;  %v1216_v25 = vld [vmem:[%s1669_s3 + $0x10] sm:$0xff]   ;;  %p1228_p4 = pnand %p1227_p3, %p1221_p0 }
  0x2e   :  { %1163 = vmatpush3.bf16.msra.mxu1 %v1215_v40 }
  0x2f   :  { %1164 = vmatprep.subr.bf16.mxu1 %v1245_v39 }
  0x32   :  { %1117 = vmatmul.mubr.msk.bf16.gmra.mrb[20].mxu0 %vm268_vm2, %v1193_v26  ;;  %1165 = vmatpush3.bf16.msra.mxu1 %v1216_v25 }
  0x33   :  { %1120 = vmatprep.mubr.msk.bf16.mxu0 %vm268_vm2, %v1194_v27  ;;  %1166 = vmatprep.subr.bf16.mxu1 %v1245_v39 }
  0x34   :  { %1149 = vmatmul.mubr.msk.bf16.gmra.mrb[16].mxu1 %vm268_vm2, %v1209_v28 }
  0x35   :  { %1152 = vmatprep.mubr.msk.bf16.mxu1 %vm268_vm2, %v1210_v29 }
  0x36   :  { %1167 = vmatpush3.bf16.msra.mxu1 %v1217_v38 }
  0x3a   :  { %1121 = vmatmul.mubr.msk.bf16.gmra.mrb[24].mxu0 %vm268_vm2, %v1195_v30 }
  0x3b   :  { %1124 = vmatprep.mubr.msk.bf16.mxu0 %vm268_vm2, %v1196_v31 }
  0x3c   :  { %1153 = vmatmul.mubr.msk.bf16.gmra.mrb[20].mxu1 %vm268_vm2, %v1211_v32 }
  0x3d   :  { %1156 = vmatprep.mubr.msk.bf16.mxu1 %vm268_vm2, %v1212_v33 }
  0x42   :  { %1125 = vmatmul.mubr.msk.bf16.gmra.mrb[28].mxu0 %vm268_vm2, %v1197_v34 }
  0x43   :  { %1128 = vmatprep.mubr.msk.bf16.mxu0 %vm268_vm2, %v1198_v35 }
  0x44   :  { %1157 = vmatmul.mubr.msk.bf16.gmra.mrb[24].mxu1 %vm268_vm2, %v1213_v36 }
  0x45   :  { %1168 = vmatprep.mubr.msk.bf16.mxu1 %vm1246_vm4, %v1245_v39 }
  0x4a   :  { %1129 = vmatmul.mubr.msk.bf16.gmra.mrb[32].mxu0 %vm268_vm2, %v1199_v37 }
  0xdd   :  { %v1098_v42 = vpop.f32.mrb[0].mxu0  ;;  %v1438_v6 = vpop.f32.mrb[0].mxu1 }
  0xde   :  { %v406_v43 = vpop.f32.mrb[1].mxu0  ;;  %v415_v44 = vadd.f32 %v1098_v42, %v1424_v41  ;;  %v1441_v10 = vpop.f32.mrb[1].mxu1 }
  0xdf   :  { %v407_v45 = vadd.f32 %v1424_v41, %v406_v43  ;;  %v1099_v46 = vpop.f32.mrb[2].mxu0  ;;  %v1443_v12 = vpop.f32.mrb[2].mxu1 }
  0xe0   :  { %v409_v47 = vpop.f32.mrb[3].mxu0  ;;  %v418_v49 = vadd.f32 %v1099_v46, %v1424_v41  ;;  %v663_v51 = vmax.f32 %v415_v44, 0.0  ;;  %v1446_v16 = vpop.f32.mrb[3].mxu1 }
  0xe1   :  { %v661_v48 = vmax.f32 %v407_v45, 0.0  ;;  %v410_v50 = vadd.f32 %v1424_v41, %v409_v47 }
  0xe2   :  { %v664_v54 = vmax.f32 %v418_v49, 0.0  ;;  %v729_v59 = vsel %vm725_vm3, %v663_v51, 0.0 }
  0xe3   :  { %v662_v52 = vmax.f32 %v410_v50, 0.0  ;;  %v726_v53 = vsel %vm725_vm3, %v661_v48, 0.0 }
  0xe4   :  { %v731_v1 = vsel %vm725_vm3, %v664_v54, 0.0 }
  0xe5   :  { %v727_v55 = vsel %vm725_vm3, %v662_v52, 0.0  ;;  %v1102_v56 = vpop.f32.mrb[4].mxu0  ;;  %v1457_v31 = vpop.f32.mrb[4].mxu1 }
  0xe6   :  { %v728_v57 = vadd.f32 %v727_v55, %v726_v53  ;;  %v422_v58 = vpop.f32.mrb[5].mxu0  ;;  %v431_v60 = vadd.f32 %v1102_v56, %v1424_v41  ;;  %v1460_v35 = vpop.f32.mrb[5].mxu1 }
  0xe7   :  { %v423_v61 = vadd.f32 %v1424_v41, %v422_v58  ;;  %v1103_v62 = vpop.f32.mrb[6].mxu0  ;;  %v1463_v37 = vpop.f32.mrb[6].mxu1 }
  0xe8   :  { %v730_v63 = vadd.f32 %v729_v59, %v728_v57  ;;  %v425_v0 = vpop.f32.mrb[7].mxu0  ;;  %v434_v3 = vadd.f32 %v1103_v62, %v1424_v41  ;;  %v667_v7 = vmax.f32 %v431_v60, 0.0  ;;  %v1469_v44 = vpop.f32.mrb[7].mxu1 }
  0xe9   :  { %v665_v2 = vmax.f32 %v423_v61, 0.0  ;;  %v426_v4 = vadd.f32 %v1424_v41, %v425_v0 }
  0xea   :  { %v732_v5 = vadd.f32 %v731_v1, %v730_v63  ;;  %v668_v13 = vmax.f32 %v434_v3, 0.0  ;;  %v737_v19 = vsel %vm725_vm3, %v667_v7, 0.0 }
  0xeb   :  { %v733_v8 = vsel %vm725_vm3, %v665_v2, 0.0  ;;  %v666_v9 = vmax.f32 %v426_v4, 0.0 }
  0xec   :  { %v734_v11 = vadd.f32 %v733_v8, %v732_v5  ;;  %v739_v26 = vsel %vm725_vm3, %v668_v13, 0.0 }
  0xed   :  { %v735_v14 = vsel %vm725_vm3, %v666_v9, 0.0  ;;  %v1106_v15 = vpop.f32.mrb[8].mxu0 }
  0xee   :  { %v736_v17 = vadd.f32 %v735_v14, %v734_v11  ;;  %v438_v18 = vpop.f32.mrb[9].mxu0  ;;  %v447_v20 = vadd.f32 %v1106_v15, %v1424_v41 }
  0xef   :  { %v439_v21 = vadd.f32 %v1424_v41, %v438_v18  ;;  %v1107_v22 = vpop.f32.mrb[10].mxu0 }
  0xf0   :  { %v738_v23 = vadd.f32 %v737_v19, %v736_v17  ;;  %v441_v24 = vpop.f32.mrb[11].mxu0  ;;  %v450_v28 = vadd.f32 %v1107_v22, %v1424_v41  ;;  %v671_v32 = vmax.f32 %v447_v20, 0.0 }
  0xf1   :  { %v669_v27 = vmax.f32 %v439_v21, 0.0  ;;  %v442_v29 = vadd.f32 %v1424_v41, %v441_v24 }
  0xf2   :  { %v740_v30 = vadd.f32 %v739_v26, %v738_v23  ;;  %v672_v40 = vmax.f32 %v450_v28, 0.0  ;;  %v745_v47 = vsel %vm725_vm3, %v671_v32, 0.0 }
  0xf3   :  { %v741_v33 = vsel %vm725_vm3, %v669_v27, 0.0  ;;  %v670_v34 = vmax.f32 %v442_v29, 0.0 }
  0xf4   :  { %v742_v36 = vadd.f32 %v741_v33, %v740_v30  ;;  %v747_v53 = vsel %vm725_vm3, %v672_v40, 0.0 }
  0xf5   :  { %v743_v42 = vsel %vm725_vm3, %v670_v34, 0.0  ;;  %v1110_v43 = vpop.f32.mrb[12].mxu0 }
  0xf6   :  { %v744_v45 = vadd.f32 %v743_v42, %v742_v36  ;;  %v454_v46 = vpop.f32.mrb[13].mxu0  ;;  %v463_v48 = vadd.f32 %v1110_v43, %v1424_v41 }
  0xf7   :  { %v455_v49 = vadd.f32 %v1424_v41, %v454_v46  ;;  %v1111_v50 = vpop.f32.mrb[14].mxu0  ;;  %v1478_v57 = vpop.f32.mrb[8].mxu1 }
  0xf8   :  { %v746_v51 = vadd.f32 %v745_v47, %v744_v45  ;;  %v457_v52 = vpop.f32.mrb[15].mxu0  ;;  %v466_v55 = vadd.f32 %v1111_v50, %v1424_v41  ;;  %v675_v58 = vmax.f32 %v463_v48, 0.0  ;;  %v1481_v61 = vpop.f32.mrb[9].mxu1 }
  0xf9   :  { %v673_v54 = vmax.f32 %v455_v49, 0.0  ;;  %v458_v56 = vadd.f32 %v1424_v41, %v457_v52  ;;  %v1483_v63 = vpop.f32.mrb[10].mxu1 }
  0xfa   :  { %v748_v39 = vadd.f32 %v747_v53, %v746_v51  ;;  %v676_v0 = vmax.f32 %v466_v55, 0.0  ;;  %v1486_v3 = vpop.f32.mrb[11].mxu1  ;;  %v753_v7 = vsel %vm725_vm3, %v675_v58, 0.0 }
  0xfb   :  { %v749_v59 = vsel %vm725_vm3, %v673_v54, 0.0  ;;  %v674_v60 = vmax.f32 %v458_v56, 0.0 }
  0xfc   :  { %v750_v62 = vadd.f32 %v749_v59, %v748_v39  ;;  %v755_v15 = vsel %vm725_vm3, %v676_v0, 0.0 }
  0xfd   :  { %v751_v1 = vsel %vm725_vm3, %v674_v60, 0.0  ;;  %v1114_v2 = vpop.f32.mrb[16].mxu0 }
  0xfe   :  { %v752_v4 = vadd.f32 %v751_v1, %v750_v62  ;;  %v470_v5 = vpop.f32.mrb[17].mxu0  ;;  %v479_v8 = vadd.f32 %v1114_v2, %v1424_v41 }
  0xff   :  { %v471_v9 = vadd.f32 %v1424_v41, %v470_v5  ;;  %v1115_v11 = vpop.f32.mrb[18].mxu0  ;;  %v1494_v21 = vpop.f32.mrb[12].mxu1 }
 0x100   :  { %v754_v13 = vadd.f32 %v753_v7, %v752_v4  ;;  %v473_v14 = vpop.f32.mrb[19].mxu0  ;;  %v482_v18 = vadd.f32 %v1115_v11, %v1424_v41  ;;  %v679_v22 = vmax.f32 %v479_v8, 0.0  ;;  %v1497_v25 = vpop.f32.mrb[13].mxu1 }
 0x101   :  { %v677_v17 = vmax.f32 %v471_v9, 0.0  ;;  %v474_v19 = vadd.f32 %v1424_v41, %v473_v14  ;;  %v1499_v27 = vpop.f32.mrb[14].mxu1 }
 0x102   :  { %v756_v20 = vadd.f32 %v755_v15, %v754_v13  ;;  %v680_v28 = vmax.f32 %v482_v18, 0.0  ;;  %v1502_v32 = vpop.f32.mrb[15].mxu1  ;;  %v761_v36 = vsel %vm725_vm3, %v679_v22, 0.0 }
 0x103   :  { %v757_v23 = vsel %vm725_vm3, %v677_v17, 0.0  ;;  %v678_v24 = vmax.f32 %v474_v19, 0.0 }
 0x104   :  { %v758_v26 = vadd.f32 %v757_v23, %v756_v20  ;;  %v763_v46 = vsel %vm725_vm3, %v680_v28, 0.0 }
 0x105   :  { %v759_v29 = vsel %vm725_vm3, %v678_v24, 0.0  ;;  %v1118_v30 = vpop.f32.mrb[20].mxu0 }
 0x106   :  { %v760_v33 = vadd.f32 %v759_v29, %v758_v26  ;;  %v486_v34 = vpop.f32.mrb[21].mxu0  ;;  %v495_v38 = vadd.f32 %v1118_v30, %v1424_v41 }
 0x107   :  { %v487_v40 = vadd.f32 %v1424_v41, %v486_v34  ;;  %v1119_v42 = vpop.f32.mrb[22].mxu0  ;;  %v1510_v51 = vpop.f32.mrb[16].mxu1 }
 0x108   :  { %v762_v43 = vadd.f32 %v761_v36, %v760_v33  ;;  %v489_v45 = vpop.f32.mrb[23].mxu0  ;;  %v498_v48 = vadd.f32 %v1119_v42, %v1424_v41  ;;  %v683_v52 = vmax.f32 %v495_v38, 0.0  ;;  %v1513_v55 = vpop.f32.mrb[17].mxu1 }
 0x109   :  { %v681_v47 = vmax.f32 %v487_v40, 0.0  ;;  %v490_v49 = vadd.f32 %v1424_v41, %v489_v45  ;;  %v1515_v39 = vpop.f32.mrb[18].mxu1 }
 0x10a   :  { %v764_v50 = vadd.f32 %v763_v46, %v762_v43  ;;  %v684_v58 = vmax.f32 %v498_v48, 0.0  ;;  %v1518_v62 = vpop.f32.mrb[19].mxu1  ;;  %v769_v2 = vsel %vm725_vm3, %v683_v52, 0.0 }
 0x10b   :  { %v765_v53 = vsel %vm725_vm3, %v681_v47, 0.0  ;;  %v682_v54 = vmax.f32 %v490_v49, 0.0 }
 0x10c   :  { %v766_v56 = vadd.f32 %v765_v53, %v764_v50  ;;  %v771_v11 = vsel %vm725_vm3, %v684_v58, 0.0 }
 0x10d   :  { %v767_v59 = vsel %vm725_vm3, %v682_v54, 0.0  ;;  %v1122_v60 = vpop.f32.mrb[24].mxu0 }
 0x10e   :  { %v768_v0 = vadd.f32 %v767_v59, %v766_v56  ;;  %v502_v1 = vpop.f32.mrb[25].mxu0  ;;  %v511_v4 = vadd.f32 %v1122_v60, %v1424_v41 }
 0x10f   :  { %v503_v5 = vadd.f32 %v1424_v41, %v502_v1  ;;  %v1123_v7 = vpop.f32.mrb[26].mxu0  ;;  %v1526_v18 = vpop.f32.mrb[20].mxu1 }
 0x110   :  { %v770_v8 = vadd.f32 %v769_v2, %v768_v0  ;;  %v505_v9 = vpop.f32.mrb[27].mxu0  ;;  %v514_v14 = vadd.f32 %v1123_v7, %v1424_v41  ;;  %v687_v19 = vmax.f32 %v511_v4, 0.0  ;;  %v1529_v23 = vpop.f32.mrb[21].mxu1 }
 0x111   :  { %v685_v13 = vmax.f32 %v503_v5, 0.0  ;;  %v506_v15 = vadd.f32 %v1424_v41, %v505_v9  ;;  %v1531_v26 = vpop.f32.mrb[22].mxu1 }
 0x112   :  { %v772_v17 = vadd.f32 %v771_v11, %v770_v8  ;;  %v688_v28 = vmax.f32 %v514_v14, 0.0  ;;  %v1534_v33 = vpop.f32.mrb[23].mxu1  ;;  %v777_v38 = vsel %vm725_vm3, %v687_v19, 0.0  ;;  %v551_v19 = vadd.f32 %v1424_v41, %v1441_v10 }
 0x113   :  { %v773_v20 = vsel %vm725_vm3, %v685_v13, 0.0  ;;  %v686_v22 = vmax.f32 %v506_v15, 0.0  ;;  %v554_v10 = vadd.f32 %v1424_v41, %v1446_v16 }
 0x114   :  { %v774_v24 = vadd.f32 %v773_v20, %v772_v17  ;;  %v779_v47 = vsel %vm725_vm3, %v688_v28, 0.0 }
 0x115   :  { %v775_v29 = vsel %vm725_vm3, %v686_v22, 0.0  ;;  %v1126_v30 = vpop.f32.mrb[28].mxu0 }
 0x116   :  { %v776_v34 = vadd.f32 %v775_v29, %v774_v24  ;;  %v518_v36 = vpop.f32.mrb[29].mxu0  ;;  %v527_v40 = vadd.f32 %v1126_v30, %v1424_v41 }
 0x117   :  { %v519_v42 = vadd.f32 %v1424_v41, %v518_v36  ;;  %v1127_v43 = vpop.f32.mrb[30].mxu0  ;;  %v1542_v53 = vpop.f32.mrb[24].mxu1  ;;  %v697_v36 = vmax.f32 %v551_v19, 0.0 }
 0x118   :  { %v778_v45 = vadd.f32 %v777_v38, %v776_v34  ;;  %v521_v46 = vpop.f32.mrb[31].mxu0  ;;  %v530_v49 = vadd.f32 %v1127_v43, %v1424_v41  ;;  %v691_v54 = vmax.f32 %v527_v40, 0.0  ;;  %v1545_v59 = vpop.f32.mrb[25].mxu1 }
 0x119   :  { %v689_v48 = vmax.f32 %v519_v42, 0.0  ;;  %v522_v50 = vadd.f32 %v1424_v41, %v521_v46  ;;  %v1547_v0 = vpop.f32.mrb[26].mxu1  ;;  %v559_v46 = vadd.f32 %v1438_v6, %v1424_v41  ;;  %v570_v6 = vadd.f32 %v1424_v41, %v1469_v44 }
 0x11a   :  { %v780_v52 = vadd.f32 %v779_v47, %v778_v45  ;;  %v692_v1 = vmax.f32 %v530_v49, 0.0  ;;  %v1550_v5 = vpop.f32.mrb[27].mxu1  ;;  %v785_v9 = vsel %vm725_vm3, %v691_v54, 0.0  ;;  %v567_v54 = vadd.f32 %v1424_v41, %v1460_v35 }
 0x11b   :  { %v781_v56 = vsel %vm725_vm3, %v689_v48, 0.0  ;;  %v690_v58 = vmax.f32 %v522_v50, 0.0  ;;  %v562_v48 = vadd.f32 %v1443_v12, %v1424_v41  ;;  %v802_v50 = vsel %vm725_vm3, %v697_v36, 0.0 }
 0x11c   :  { %v782_v60 = vadd.f32 %v781_v56, %v780_v52  ;;  %v787_v20 = vsel %vm725_vm3, %v692_v1, 0.0  ;;  %v698_v52 = vmax.f32 %v554_v10, 0.0  ;;  %v699_v16 = vmax.f32 %v559_v46, 0.0 }
 0x11d   :  { %v783_v2 = vsel %vm725_vm3, %v690_v58, 0.0  ;;  %v1130_v4 = vpop.f32.mrb[32].mxu0 }
 0x11e   :  { %v784_v7 = vadd.f32 %v783_v2, %v782_v60  ;;  %v534_v8 = vpop.f32.mrb[33].mxu0  ;;  %v543_v11 = vadd.f32 %v1130_v4, %v1424_v41  ;;  %v700_v60 = vmax.f32 %v562_v48, 0.0  ;;  %v804_v1 = vsel %vm725_vm3, %v698_v52, 0.0 }
 0x11f   :  { %v535_v13 = vadd.f32 %v1424_v41, %v534_v8  ;;  %v1131_v14 = vpop.f32.mrb[34].mxu0  ;;  %v701_v2 = vmax.f32 %v567_v54, 0.0  ;;  %v806_v12 = vsel %vm725_vm3, %v699_v16, 0.0  ;;  %v607_v48 = vadd.f32 %v1494_v21, %v1424_v41 }
 0x120   :  { %v786_v15 = vadd.f32 %v785_v9, %v784_v7  ;;  %v537_v17 = vpop.f32.mrb[35].mxu0  ;;  %v546_v24 = vadd.f32 %v1131_v14, %v1424_v41  ;;  %v695_v30 = vmax.f32 %v543_v11, 0.0  ;;  %v575_v7 = vadd.f32 %v1457_v31, %v1424_v41 }
 0x121   :  { %v693_v22 = vmax.f32 %v535_v13, 0.0  ;;  %v538_v28 = vadd.f32 %v1424_v41, %v537_v17  ;;  %v808_v8 = vsel %vm725_vm3, %v700_v60, 0.0  ;;  %v810_v35 = vsel %vm725_vm3, %v701_v2, 0.0 }
 0x122   :  { %v1560_v29 = vadd.f32 %v787_v20, %v786_v15  ;;  %v696_v40 = vmax.f32 %v546_v24, 0.0  ;;  %v798_v45 = vsel %vm725_vm3, %v695_v30, 0.0  ;;  %v578_v11 = vadd.f32 %v1463_v37, %v1424_v41 }
 0x123   :  { %v694_v34 = vmax.f32 %v538_v28, 0.0  ;;  %v795_v38 = vsel %vm725_vm3, %v693_v22, 0.0  ;;  %v702_v13 = vmax.f32 %v570_v6, 0.0  ;;  %v583_v14 = vadd.f32 %v1424_v41, %v1481_v61 }
 0x124   :  { %v800_v49 = vsel %vm725_vm3, %v696_v40, 0.0  ;;  %v703_v44 = vmax.f32 %v575_v7, 0.0  ;;  %v704_v19 = vmax.f32 %v578_v11, 0.0  ;;  %v586_v31 = vadd.f32 %v1424_v41, %v1486_v3 }
 0x125   :  { %v796_v42 = vsel %vm725_vm3, %v694_v34, 0.0  ;;  %v812_v20 = vsel %vm725_vm3, %v702_v13, 0.0  ;;  %v705_v22 = vmax.f32 %v583_v14, 0.0  ;;  %v591_v37 = vadd.f32 %v1478_v57, %v1424_v41 }
 0x126   :  { %v797_v43 = vadd.f32 %v796_v42, %v795_v38  ;;  %v814_v28 = vsel %vm725_vm3, %v703_v44, 0.0  ;;  %v594_v61 = vadd.f32 %v1483_v63, %v1424_v41  ;;  %v816_v34 = vsel %vm725_vm3, %v704_v19, 0.0 }
 0x127   :  { %v818_v36 = vsel %vm725_vm3, %v705_v22, 0.0  ;;  %v706_v38 = vmax.f32 %v586_v31, 0.0  ;;  %v599_v40 = vadd.f32 %v1424_v41, %v1497_v25  ;;  %v707_v3 = vmax.f32 %v591_v37, 0.0 }
 0x128   :  { %v799_v47 = vadd.f32 %v798_v45, %v797_v43  ;;  %v708_v43 = vmax.f32 %v594_v61, 0.0  ;;  %v602_v57 = vadd.f32 %v1424_v41, %v1502_v32  ;;  %v610_v52 = vadd.f32 %v1499_v27, %v1424_v41 }
 0x129   :  { %v820_v45 = vsel %vm725_vm3, %v706_v38, 0.0  ;;  %v709_v46 = vmax.f32 %v599_v40, 0.0  ;;  %v822_v63 = vsel %vm725_vm3, %v707_v3, 0.0  ;;  %v711_v32 = vmax.f32 %v607_v48, 0.0 }
 0x12a   :  { %v801_v56 = vadd.f32 %v800_v49, %v799_v47  ;;  %v824_v49 = vsel %vm725_vm3, %v708_v43, 0.0  ;;  %v710_v54 = vmax.f32 %v602_v57, 0.0  ;;  %v712_v60 = vmax.f32 %v610_v52, 0.0 }
 0x12b   :  { %v826_v25 = vsel %vm725_vm3, %v709_v46, 0.0  ;;  %v618_v21 = vadd.f32 %v1424_v41, %v1518_v62  ;;  %v623_v27 = vadd.f32 %v1510_v51, %v1424_v41  ;;  %v634_v51 = vadd.f32 %v1424_v41, %v1534_v33 }
 0x12c   :  { %v803_v58 = vadd.f32 %v802_v50, %v801_v56  ;;  %v615_v56 = vadd.f32 %v1424_v41, %v1513_v55  ;;  %v626_v55 = vadd.f32 %v1515_v39, %v1424_v41  ;;  %v832_v7 = vsel %vm725_vm3, %v712_v60, 0.0 }
 0x12d   :  { %v715_v62 = vmax.f32 %v623_v27, 0.0  ;;  %v639_v19 = vadd.f32 %v1526_v18, %v1424_v41  ;;  %v642_v31 = vadd.f32 %v1531_v26, %v1424_v41  ;;  %v650_v38 = vadd.f32 %v1424_v41, %v1550_v5 }
 0x12e   :  { %v805_v4 = vadd.f32 %v804_v1, %v803_v58  ;;  %v828_v1 = vsel %vm725_vm3, %v710_v54, 0.0  ;;  %v713_v2 = vmax.f32 %v615_v56, 0.0  ;;  %v716_v14 = vmax.f32 %v626_v55, 0.0 }
 0x12f   :  { %v838_v39 = vsel %vm725_vm3, %v715_v62, 0.0  ;;  %v719_v33 = vmax.f32 %v639_v19, 0.0  ;;  %v655_v26 = vadd.f32 %v1542_v53, %v1424_v41  ;;  %v722_v46 = vmax.f32 %v650_v38, 0.0 }
 0x130   :  { %v807_v9 = vadd.f32 %v806_v12, %v805_v4  ;;  %v830_v4 = vsel %vm725_vm3, %v711_v32, 0.0 }
 0x132   :  { %v809_v15 = vadd.f32 %v808_v8, %v807_v9  ;;  %v834_v8 = vsel %vm725_vm3, %v713_v2, 0.0  ;;  %v714_v9 = vmax.f32 %v618_v21, 0.0 }
 0x134   :  { %v811_v17 = vadd.f32 %v810_v35, %v809_v15  ;;  %v631_v35 = vadd.f32 %v1424_v41, %v1529_v23  ;;  %v836_v15 = vsel %vm725_vm3, %v714_v9, 0.0 }
 0x136   :  { %v813_v24 = vadd.f32 %v812_v20, %v811_v17  ;;  %v717_v44 = vmax.f32 %v631_v35, 0.0  ;;  %v840_v20 = vsel %vm725_vm3, %v716_v14, 0.0 }
 0x138   :  { %v815_v30 = vadd.f32 %v814_v28, %v813_v24  ;;  %v842_v23 = vsel %vm725_vm3, %v717_v44, 0.0  ;;  %v718_v24 = vmax.f32 %v634_v51, 0.0  ;;  %v647_v28 = vadd.f32 %v1424_v41, %v1545_v59 }
 0x13a   :  { %v817_v42 = vadd.f32 %v816_v34, %v815_v30  ;;  %v789_v30 = vrot.slane %v1560_v29, 4  ;;  %v720_v34 = vmax.f32 %v642_v31, 0.0  ;;  %v844_v18 = vsel %vm725_vm3, %v718_v24, 0.0 }
 0x13c   :  { %v819_v10 = vadd.f32 %v818_v36, %v817_v42  ;;  %v721_v36 = vmax.f32 %v647_v28, 0.0  ;;  %v846_v42 = vsel %vm725_vm3, %v719_v33, 0.0  ;;  %v790_v59 = vadd.f32 %v789_v30, %v1560_v29 }
 0x13e   :  { %v821_v47 = vadd.f32 %v820_v45, %v819_v10  ;;  %v848_v10 = vsel %vm725_vm3, %v720_v34, 0.0  ;;  %v850_v43 = vsel %vm725_vm3, %v721_v36, 0.0  ;;  %v658_v45 = vadd.f32 %v1547_v0, %v1424_v41 }
 0x13f   :  { %v791_v5 = vrot.slane %v790_v59, 2 }
 0x140   :  { %v823_v50 = vadd.f32 %v822_v63, %v821_v47  ;;  %v723_v47 = vmax.f32 %v655_v26, 0.0  ;;  %v724_v48 = vmax.f32 %v658_v45, 0.0 }
 0x141   :  { %v792_v29 = vadd.f32 %v791_v5, %v790_v59 }
 0x142   :  { %v825_v16 = vadd.f32 %v824_v49, %v823_v50  ;;  %v852_v49 = vsel %vm725_vm3, %v722_v46, 0.0  ;;  %v854_v53 = vsel %vm725_vm3, %v723_v47, 0.0  ;;  %v856_v52 = vsel %vm725_vm3, %v724_v48, 0.0 }
 0x143   :  { %v793_v56 = vrot.slane %v792_v29, 1 }
 0x144   :  { %v827_v58 = vadd.f32 %v826_v25, %v825_v16 }
 0x145   :  { %v794_v41 = vadd.f32 %v793_v56, %v792_v29 }
 0x146   :  { %v829_v6 = vadd.f32 %v828_v1, %v827_v58 }
 0x147   :  { %v864_v60 = vmul.f32 0.00390625, %v794_v41 }
 0x148   :  { %v831_v12 = vadd.f32 %v830_v4, %v829_v6 }
 0x149   :  { %v866_v21 = vpack.c.bf16 %v864_v60, %v864_v60 }
 0x14a   :  { %v833_v11 = vadd.f32 %v832_v7, %v831_v12 }
 0x14b   :  { %v885_v27 = vunpack.c.l.b16 %v866_v21 }
 0x14c   :  { %v835_v13 = vadd.f32 %v834_v8, %v833_v11  ;;  %v1047_v8 = vld [vmem:[%s1670_s4] ss:$0 sm:$0xff] }
 0x14e   :  { %v837_v17 = vadd.f32 %v836_v15, %v835_v13 }
 0x150   :  { %v839_v22 = vadd.f32 %v838_v39, %v837_v17 }
 0x152   :  { %v841_v37 = vadd.f32 %v840_v20, %v839_v22 }
 0x154   :  { %v843_v61 = vadd.f32 %v842_v23, %v841_v37 }
 0x156   :  { %v845_v40 = vadd.f32 %v844_v18, %v843_v61 }
 0x158   :  { %v847_v3 = vadd.f32 %v846_v42, %v845_v40 }
 0x15a   :  { %v849_v57 = vadd.f32 %v848_v10, %v847_v3 }
 0x15c   :  { %v851_v63 = vadd.f32 %v850_v43, %v849_v57 }
 0x15e   :  { %v853_v50 = vadd.f32 %v852_v49, %v851_v63 }
 0x160   :  { %v855_v25 = vadd.f32 %v854_v53, %v853_v50 }
 0x162   :  { %v857_v54 = vadd.f32 %v856_v52, %v855_v25 }
 0x164   :  { %v858_v16 = vrot.slane %v857_v54, 4 }
 0x166   :  { %v859_v32 = vadd.f32 %v858_v16, %v857_v54 }
 0x168   :  { %v860_v0 = vrot.slane %v859_v32, 2 }
 0x16a   :  { %v861_v58 = vadd.f32 %v860_v0, %v859_v32 }
 0x16c   :  { %v862_v1 = vrot.slane %v861_v58, 1 }
 0x16e   :  { %v863_v2 = vadd.f32 %v862_v1, %v861_v58 }
 0x170   :  { %v865_v6 = vmul.f32 0.00390625, %v863_v2 }
 0x172   :  { %v867_v4 = vpack.c.bf16 %v865_v6, %v865_v6 }
 0x174   :  { %v886_v12 = vunpack.c.l.b16 %v867_v4 }
 0x176   :  { %v888_v55 = vsel %vm887_vm5, %v886_v12, %v885_v27 }
 0x177   :  { %v889_v7 = vpack.c.b16 %v888_v55, %v888_v55 }
 0x179   :  { %1169 = vmatmul.mubr.msk.bf16.vlgmr.msra.gmra.mrb[28].mxu1 %vm725_vm3, %v889_v7 }
 0x24c   :  { %v951_v9 = vpop.f32.mrb[28].mxu1 }
 0x24d   :  { %v952_v35 = vadd.f32 %v1047_v8, %v951_v9  ;;  %v1170_v11 = vpop.f32.mrb[29].mxu1 }
 0x24e   :  { %v954_v62 = vpop.f32.mrb[30].mxu1 }
 0x24f   :  { %v1171_v13 = vpop.f32.mrb[31].mxu1  ;;  %v957_v14 = vmul.f32 %v952_v35, %v952_v35 }
 0x251   :  { %v959_v15 = vsel %vm958_vm6, %v957_v14, 0.0 }
 0x252   :  { %960 = vadd.xlane.f32.xlu0 %v959_v15 }
 0x2df   :  { %v961_v44 = vpop.xlane.xlu0 %960 }
 0x2e0   :  { %v962_v51 = vmax.f32 %v961_v44, 1e-24 }
 0x2e2   :  { %1218 = vrsqrt.f32 %v962_v51 }
 0x2ec   :  { %v1219_v17 = vpop.eup %1218 }
 0x2ed   :  { %v964_v39 = vmul.f32 %v1219_v17, %v952_v35 }
 0x2ef   :  { %965 = vst.msk [vmem:[#allocation2] sm:$0x3] %vm958_vm6, %v964_v39 }
 0x2f0   :  { %1231 = shalt.err (!%p1228_p4)
}
 0x2f1   :  { %s1232_s21 = scalar_lea.hbm %s1671_s5, 32 }
 0x2f2   :  { %p1233_p5 = scmp.ne.s32.totalorder %s1671_s5, %s1232_s21  ;;  %p1236_p6 = scmp.lt.u32.totalorder %s1232_s21, %s1671_s5 }
 0x2f4   :  { %p1238_p7 = pnand %p1236_p6, %p1233_p5 }
 0x2f6   :  { %1241 = shalt.err (!%p1238_p7)
}
 0x2f7   :  { %975 = dma.vmem_to_hbm [thread:$0]  %s973_s18, 32, %s1671_s5, [#allocation3]  }
 0x2f8   :  { %1242 = dma.done.wait [#allocation3], 32  }
 0x2f9   :  { %1243 = vsyncadd [#allocation3], 4294967264 }
 0x2fa   :  { %979 = vsyncpa [#allocation3], 1 }

</bundles_post_ra>
